<compile_context>
chip_gen: v7x
topology: tpu7x:2x2x1
jax: 0.10.0
libtpu: 0.0.40
codegen_flags: <defaults>
</compile_context>

<pallas_src>
import numpy as np
import jax
import jax.numpy as jnp
from jax import lax
from jax.experimental import pallas as pl
from jax.experimental.pallas import tpu as pltpu


def bidaf_attention_kernel(c_ref, q_ref, c_mask_ref, q_mask_ref,
                           cw_ref, qw_ref, cqw_ref, bias_ref, out_ref):
    # c_ref:      (Bt, c_len, D)     q_ref:      (Bt, q_len, D)
    # c_mask_ref: (Bt, c_len, 1)     q_mask_ref: (Bt, 1, q_len)
    # cw_ref/qw_ref/cqw_ref: (1, D)  bias_ref: (1, 1)
    # out_ref:    (Bt, c_len, 4*D)
    c = c_ref[...]                                   # f32, also emitted verbatim
    q = q_ref[...]
    c_mask = c_mask_ref[...]
    q_mask = q_mask_ref[...]
    cw = cw_ref[...]
    qw = qw_ref[...]
    cqw = cqw_ref[...]

    # bf16 copies for every MXU operand (f32 accumulation below).
    c_bf = c.astype(jnp.bfloat16)
    q_bf = q.astype(jnp.bfloat16)

    # ---- similarity matrix s = s0 + s1 + s2 + bias  -> (Bt, c_len, q_len) ----
    # s0/s1: VPU multiply + lane-axis reduce (no degenerate width-1 MXU passes).
    s0 = jnp.sum(c * cw, axis=-1, keepdims=True)                    # (Bt, c_len, 1)
    s1 = jnp.sum(q * qw, axis=-1)[:, None, :]                       # (Bt, 1, q_len)
    s2 = jnp.einsum('bcd,bqd->bcq',
                    (c * cqw).astype(jnp.bfloat16), q_bf,
                    preferred_element_type=jnp.float32)             # (Bt, c_len, q_len)
    s = s2 + s0 + s1 + bias_ref[...]

    neg = jnp.float32(-1e30)

    # ---- masked softmax over the query axis (torch dim=2) --------------------
    sq = jnp.where(q_mask > 0, s, neg)
    m1 = jnp.max(sq, axis=2, keepdims=True)
    e1 = jnp.exp(sq - m1)
    p1 = e1 * pl.reciprocal(jnp.sum(e1, axis=2, keepdims=True), approx=True)

    # ---- masked softmax over the context axis (torch dim=1) ------------------
    sc = jnp.where(c_mask > 0, s, neg)
    m2 = jnp.max(sc, axis=1, keepdims=True)
    e2 = jnp.exp(sc - m2)
    p2 = e2 * jnp.broadcast_to(
        pl.reciprocal(jnp.sum(e2, axis=1, keepdims=True), approx=True), e2.shape)

    p1_bf = p1.astype(jnp.bfloat16)
    p2_bf = p2.astype(jnp.bfloat16)

    # ---- attention outputs ----------------------------------------------------
    # a = p1 @ q
    a = jnp.einsum('bcq,bqd->bcd', p1_bf, q_bf,
                   preferred_element_type=jnp.float32)              # (Bt, c_len, D)
    # b = (p1 @ p2^T) @ c, reassociated as p1 @ (p2^T @ c):
    qc = jnp.einsum('bcq,bcd->bqd', p2_bf, c_bf,
                    preferred_element_type=jnp.float32)             # (Bt, q_len, D)
    b = jnp.einsum('bcq,bqd->bcd', p1_bf, qc.astype(jnp.bfloat16),
                   preferred_element_type=jnp.float32)              # (Bt, c_len, D)

    # Single lane-dense store of [c, a, c*a, c*b].
    out_ref[...] = jnp.concatenate([c, a, c * a, c * b], axis=-1)


def _pick_bt(B, c_len, q_len, D, budget_bytes=20 * 2**20, bt_cap=8):
    """Largest per-step batch block that (a) divides B, (b) keeps a conservative
    double-buffered working-set estimate under `budget_bytes` (safe for v7x's
    smaller scoped VMEM), preferring choices that leave >= 2 grid steps so both
    v7x TensorCores stay busy."""
    per_batch = 4 * (c_len * D + q_len * D + c_len * 4 * D)   # f32 c/q/out tiles
    per_batch += 5 * 4 * c_len * q_len                        # s / p1 / p2 / exp temporaries
    fits = [bt for bt in range(1, min(B, bt_cap) + 1)
            if B % bt == 0 and 2 * bt * per_batch <= budget_bytes]
    if not fits:
        return 1
    multi_step = [bt for bt in fits if B // bt >= 2]
    return max(multi_step) if multi_step else max(fits)


def bidaf_attention(c, q, c_mask, q_mask, p):
    """c: (B, c_len, D), q: (B, q_len, D), masks: (B, len) bool/int.  Output f32."""
    B, c_len, D = c.shape
    q_len = q.shape[1]

    c = c.astype(jnp.float32)
    q = q.astype(jnp.float32)
    c_mask_f = c_mask.astype(jnp.float32).reshape(B, c_len, 1)
    q_mask_f = q_mask.astype(jnp.float32).reshape(B, 1, q_len)

    cw = p['c_weight'].reshape(1, D).astype(jnp.float32)
    qw = p['q_weight'].reshape(1, D).astype(jnp.float32)
    cqw = p['cq_weight'].reshape(1, D).astype(jnp.float32)
    bias = p['bias'].reshape(1, 1).astype(jnp.float32)

    Bt = _pick_bt(B, c_len, q_len, D)
    grid = (B // Bt,)

    # Conservative scoped-VMEM request (capped at v7x physical 64 MiB).
    per_batch = 4 * (c_len * D + q_len * D + c_len * 4 * D) + 5 * 4 * c_len * q_len
    vmem_limit = int(min(64 * 2**20, max(32 * 2**20, 3 * Bt * per_batch)))

    # TODO(synk): for extremely long contexts additionally tile c_len with a
    # two-pass softmax over the context axis; at typical BiDAF sizes the
    # per-step block fits VMEM, so batch blocking is the right granularity.
    out = pl.pallas_call(
        bidaf_attention_kernel,
        out_shape=jax.ShapeDtypeStruct((B, c_len, 4 * D), jnp.float32),
        grid=grid,
        in_specs=[
            pl.BlockSpec((Bt, c_len, D), lambda b: (b, 0, 0)),     # c
            pl.BlockSpec((Bt, q_len, D), lambda b: (b, 0, 0)),     # q
            pl.BlockSpec((Bt, c_len, 1), lambda b: (b, 0, 0)),     # c_mask (column)
            pl.BlockSpec((Bt, 1, q_len), lambda b: (b, 0, 0)),     # q_mask (row)
            pl.BlockSpec((1, D), lambda b: (0, 0)),                # c_weight
            pl.BlockSpec((1, D), lambda b: (0, 0)),                # q_weight
            pl.BlockSpec((1, D), lambda b: (0, 0)),                # cq_weight
            pl.BlockSpec((1, 1), lambda b: (0, 0)),                # bias
        ],
        out_specs=pl.BlockSpec((Bt, c_len, 4 * D), lambda b: (b, 0, 0)),
        compiler_params=pltpu.CompilerParams(
            dimension_semantics=("parallel",),
            vmem_limit_bytes=vmem_limit,
        ),
    )(c, q, c_mask_f, q_mask_f, cw, qw, cqw, bias)
    return out


def init_params(key, D):
    """Deterministic xavier-style init for the module parameters."""
    k1, k2, k3, k4 = jax.random.split(key, 4)
    bound = float(np.sqrt(6.0 / (D + 1)))
    return dict(
        c_weight=jax.random.uniform(k1, (D, 1), jnp.float32, -bound, bound),
        q_weight=jax.random.uniform(k2, (D, 1), jnp.float32, -bound, bound),
        cq_weight=jax.random.uniform(k3, (1, 1, D), jnp.float32, -bound, bound),
        bias=jax.random.uniform(k4, (1,), jnp.float32, -0.1, 0.1),
    )


def reference(c, q, c_mask, q_mask, p):
    """Pure-JAX f32 reference with the module's exact semantics (eval mode)."""
    cm = c_mask.astype(jnp.float32)[:, :, None]                    # (B, c_len, 1)
    qm = q_mask.astype(jnp.float32)[:, None, :]                    # (B, 1, q_len)
    s0 = c @ p['c_weight']                                         # (B, c_len, 1)
    s1 = jnp.swapaxes(q @ p['q_weight'], 1, 2)                     # (B, 1, q_len)
    s2 = jnp.einsum('bcd,bqd->bcq', c * p['cq_weight'], q)         # (B, c_len, q_len)
    s = s0 + s1 + s2 + p['bias']
    s1m = qm * s + (1.0 - qm) * (-1e30)
    s2m = cm * s + (1.0 - cm) * (-1e30)
    p1 = jax.nn.softmax(s1m, axis=2)
    p2 = jax.nn.softmax(s2m, axis=1)
    a = jnp.einsum('bcq,bqd->bcd', p1, q)
    t = jnp.einsum('bcq,bkq->bck', p1, p2)
    b = jnp.einsum('bck,bkd->bcd', t, c)
    return jnp.concatenate([c, a, c * a, c * b], axis=-1)


if __name__ == "__main__":
    # D is the incoming feature dim (2*hidden_size of the upstream BiLSTM encoder).
    B, c_len, q_len, D = 2, 16, 8, 64
    key = jax.random.PRNGKey(0)
    kc, kq, kp = jax.random.split(key, 3)

    c = jax.random.normal(kc, (B, c_len, D), jnp.float32)
    q = jax.random.normal(kq, (B, q_len, D), jnp.float32)
    c_lens = jnp.array([c_len, 11], jnp.int32)
    q_lens = jnp.array([q_len, 5], jnp.int32)
    c_mask = jnp.arange(c_len)[None, :] < c_lens[:, None]          # (B, c_len) bool
    q_mask = jnp.arange(q_len)[None, :] < q_lens[:, None]          # (B, q_len) bool

    params = init_params(kp, D)

    out = bidaf_attention(c, q, c_mask, q_mask, params)
    jax.block_until_ready(out)

    ref = reference(c, q, c_mask, q_mask, params)
    # bf16 MXU operands + approx EUP reciprocal => tolerance relaxed vs. pure f32.
    np.testing.assert_allclose(np.asarray(out), np.asarray(ref), rtol=5e-2, atol=5e-2)

    print("KERNEL_OK")
</pallas_src>

<mosaic_0001>
module attributes {stable_mosaic.version = 11 : i64} {
  func.func @bidaf_attention_kernel(%arg0: i32, %arg1: memref<1x16x64xf32, #tpu.memory_space<vmem>>, %arg2: memref<1x8x64xf32, #tpu.memory_space<vmem>>, %arg3: memref<1x16x1xf32, #tpu.memory_space<vmem>>, %arg4: memref<1x1x8xf32, #tpu.memory_space<vmem>>, %arg5: memref<1x64xf32, #tpu.memory_space<vmem>>, %arg6: memref<1x64xf32, #tpu.memory_space<vmem>>, %arg7: memref<1x64xf32, #tpu.memory_space<vmem>>, %arg8: memref<1x1xf32, #tpu.memory_space<vmem>>, %arg9: memref<1x16x256xf32, #tpu.memory_space<vmem>>) attributes {dimension_semantics = [#tpu.dimension_semantics<parallel>], iteration_bounds = array<i64: 2>, scalar_prefetch = 0 : i64, scratch_operands = 0 : i64, tpu.core_type = #tpu.core_type<tc>, window_params = [{transform_indices = @transform_0, window_bounds = array<i64: 1, 16, 64>}, {transform_indices = @transform_1, window_bounds = array<i64: 1, 8, 64>}, {transform_indices = @transform_2, window_bounds = array<i64: 1, 16, 1>}, {transform_indices = @transform_3, window_bounds = array<i64: 1, 1, 8>}, {pipeline_mode = #tpu.pipeline_mode<synchronous>, transform_indices = @transform_4, window_bounds = array<i64: 1, 64>}, {pipeline_mode = #tpu.pipeline_mode<synchronous>, transform_indices = @transform_5, window_bounds = array<i64: 1, 64>}, {pipeline_mode = #tpu.pipeline_mode<synchronous>, transform_indices = @transform_6, window_bounds = array<i64: 1, 64>}, {pipeline_mode = #tpu.pipeline_mode<synchronous>, transform_indices = @transform_7, window_bounds = array<i64: 1, 1>}, {transform_indices = @transform_8, window_bounds = array<i64: 1, 16, 256>}]} {
    %c0 = arith.constant 0 : index
    %c0_0 = arith.constant 0 : index
    %c0_1 = arith.constant 0 : index
    %0 = vector.load %arg1[%c0, %c0_0, %c0_1] : memref<1x16x64xf32, #tpu.memory_space<vmem>>, vector<1x16x64xf32>
    %c0_2 = arith.constant 0 : index
    %c0_3 = arith.constant 0 : index
    %c0_4 = arith.constant 0 : index
    %1 = vector.load %arg2[%c0_2, %c0_3, %c0_4] : memref<1x8x64xf32, #tpu.memory_space<vmem>>, vector<1x8x64xf32>
    %c0_5 = arith.constant 0 : index
    %c0_6 = arith.constant 0 : index
    %c0_7 = arith.constant 0 : index
    %2 = vector.load %arg3[%c0_5, %c0_6, %c0_7] : memref<1x16x1xf32, #tpu.memory_space<vmem>>, vector<1x16x1xf32>
    %c0_8 = arith.constant 0 : index
    %c0_9 = arith.constant 0 : index
    %c0_10 = arith.constant 0 : index
    %3 = vector.load %arg4[%c0_8, %c0_9, %c0_10] : memref<1x1x8xf32, #tpu.memory_space<vmem>>, vector<1x1x8xf32>
    %c0_11 = arith.constant 0 : index
    %c0_12 = arith.constant 0 : index
    %4 = vector.load %arg5[%c0_11, %c0_12] : memref<1x64xf32, #tpu.memory_space<vmem>>, vector<1x64xf32>
    %c0_13 = arith.constant 0 : index
    %c0_14 = arith.constant 0 : index
    %5 = vector.load %arg6[%c0_13, %c0_14] : memref<1x64xf32, #tpu.memory_space<vmem>>, vector<1x64xf32>
    %c0_15 = arith.constant 0 : index
    %c0_16 = arith.constant 0 : index
    %6 = vector.load %arg7[%c0_15, %c0_16] : memref<1x64xf32, #tpu.memory_space<vmem>>, vector<1x64xf32>
    %7 = arith.truncf %0 : vector<1x16x64xf32> to vector<1x16x64xbf16>
    %8 = arith.truncf %1 : vector<1x8x64xf32> to vector<1x8x64xbf16>
    %9 = vector.shape_cast %4 : vector<1x64xf32> to vector<1x1x64xf32>
    %10 = vector.broadcast %9 : vector<1x1x64xf32> to vector<1x16x64xf32>
    %11 = arith.mulf %0, %10 : vector<1x16x64xf32>
    %cst = arith.constant dense<0.000000e+00> : vector<1x16xf32>
    %12 = vector.multi_reduction <add>, %11, %cst [2] : vector<1x16x64xf32> to vector<1x16xf32>
    %13 = vector.shape_cast %12 : vector<1x16xf32> to vector<1x16x1xf32>
    %14 = vector.shape_cast %5 : vector<1x64xf32> to vector<1x1x64xf32>
    %15 = vector.broadcast %14 : vector<1x1x64xf32> to vector<1x8x64xf32>
    %16 = arith.mulf %1, %15 : vector<1x8x64xf32>
    %cst_17 = arith.constant dense<0.000000e+00> : vector<1x8xf32>
    %17 = vector.multi_reduction <add>, %16, %cst_17 [2] : vector<1x8x64xf32> to vector<1x8xf32>
    %18 = vector.shape_cast %17 : vector<1x8xf32> to vector<1x1x8xf32>
    %19 = vector.shape_cast %6 : vector<1x64xf32> to vector<1x1x64xf32>
    %20 = vector.broadcast %19 : vector<1x1x64xf32> to vector<1x16x64xf32>
    %21 = arith.mulf %0, %20 : vector<1x16x64xf32>
    %22 = arith.truncf %21 : vector<1x16x64xf32> to vector<1x16x64xbf16>
    "tpu.trace_start"() <{level = 10 : i32, message = "bcd,bqd->bcq"}> : () -> ()
    %cst_18 = arith.constant dense<0.000000e+00> : vector<1x16x8xf32>
    %23 = tpu.matmul %22, %8, %cst_18 {dimension_numbers = #tpu.dot_dimension_numbers<[2], [2], [1], [1], [0, 0, 0, 1, 1, 1], [0], [0]>} : vector<1x16x64xbf16>, vector<1x8x64xbf16>, vector<1x16x8xf32> -> vector<1x16x8xf32>
    "tpu.trace_stop"() : () -> ()
    %24 = vector.broadcast %13 : vector<1x16x1xf32> to vector<1x16x8xf32>
    %25 = arith.addf %23, %24 : vector<1x16x8xf32>
    %26 = vector.broadcast %18 : vector<1x1x8xf32> to vector<1x16x8xf32>
    %27 = arith.addf %25, %26 : vector<1x16x8xf32>
    %c0_19 = arith.constant 0 : index
    %c0_20 = arith.constant 0 : index
    %28 = vector.load %arg8[%c0_19, %c0_20] : memref<1x1xf32, #tpu.memory_space<vmem>>, vector<1x1xf32>
    %29 = vector.shape_cast %28 : vector<1x1xf32> to vector<1x1x1xf32>
    %30 = vector.broadcast %29 : vector<1x1x1xf32> to vector<1x16x8xf32>
    %31 = arith.addf %27, %30 : vector<1x16x8xf32>
    %cst_21 = arith.constant 0.000000e+00 : f32
    %32 = vector.broadcast %cst_21 : f32 to vector<1x1x8xf32>
    %33 = arith.cmpf ogt, %3, %32 : vector<1x1x8xf32>
    %cst_22 = arith.constant -1.000000e+30 : f32
    %34 = vector.shape_cast %33 : vector<1x1x8xi1> to vector<1x1x8xi1>
    %35 = vector.broadcast %34 : vector<1x1x8xi1> to vector<1x16x8xi1>
    %36 = vector.broadcast %cst_22 : f32 to vector<1x16x8xf32>
    %37 = arith.select %35, %31, %36 : vector<1x16x8xi1>, vector<1x16x8xf32>
    %cst_23 = arith.constant dense<0xFF800000> : vector<1x16xf32>
    %38 = vector.multi_reduction <maximumf>, %37, %cst_23 [2] : vector<1x16x8xf32> to vector<1x16xf32>
    %39 = vector.shape_cast %38 : vector<1x16xf32> to vector<1x16x1xf32>
    %40 = vector.broadcast %39 : vector<1x16x1xf32> to vector<1x16x8xf32>
    %41 = arith.subf %37, %40 : vector<1x16x8xf32>
    %42 = math.exp %41 : vector<1x16x8xf32>
    %cst_24 = arith.constant dense<0.000000e+00> : vector<1x16xf32>
    %43 = vector.multi_reduction <add>, %42, %cst_24 [2] : vector<1x16x8xf32> to vector<1x16xf32>
    %44 = vector.shape_cast %43 : vector<1x16xf32> to vector<1x16x1xf32>
    %45 = tpu.reciprocal %44 {approx = true} : vector<1x16x1xf32> -> vector<1x16x1xf32>
    %46 = vector.broadcast %45 : vector<1x16x1xf32> to vector<1x16x8xf32>
    %47 = arith.mulf %42, %46 : vector<1x16x8xf32>
    %cst_25 = arith.constant 0.000000e+00 : f32
    %48 = vector.broadcast %cst_25 : f32 to vector<1x16x1xf32>
    %49 = arith.cmpf ogt, %2, %48 : vector<1x16x1xf32>
    %cst_26 = arith.constant -1.000000e+30 : f32
    %50 = vector.shape_cast %49 : vector<1x16x1xi1> to vector<1x16x1xi1>
    %51 = vector.broadcast %50 : vector<1x16x1xi1> to vector<1x16x8xi1>
    %52 = vector.broadcast %cst_26 : f32 to vector<1x16x8xf32>
    %53 = arith.select %51, %31, %52 : vector<1x16x8xi1>, vector<1x16x8xf32>
    %cst_27 = arith.constant dense<0xFF800000> : vector<1x8xf32>
    %54 = vector.multi_reduction <maximumf>, %53, %cst_27 [1] : vector<1x16x8xf32> to vector<1x8xf32>
    %55 = vector.shape_cast %54 : vector<1x8xf32> to vector<1x1x8xf32>
    %56 = vector.broadcast %55 : vector<1x1x8xf32> to vector<1x16x8xf32>
    %57 = arith.subf %53, %56 : vector<1x16x8xf32>
    %58 = math.exp %57 : vector<1x16x8xf32>
    %cst_28 = arith.constant dense<0.000000e+00> : vector<1x8xf32>
    %59 = vector.multi_reduction <add>, %58, %cst_28 [1] : vector<1x16x8xf32> to vector<1x8xf32>
    %60 = vector.shape_cast %59 : vector<1x8xf32> to vector<1x1x8xf32>
    %61 = tpu.reciprocal %60 {approx = true} : vector<1x1x8xf32> -> vector<1x1x8xf32>
    %62 = vector.shape_cast %61 : vector<1x1x8xf32> to vector<1x1x8xf32>
    %63 = vector.broadcast %62 : vector<1x1x8xf32> to vector<1x16x8xf32>
    %64 = arith.mulf %58, %63 : vector<1x16x8xf32>
    %65 = arith.truncf %47 : vector<1x16x8xf32> to vector<1x16x8xbf16>
    %66 = arith.truncf %64 : vector<1x16x8xf32> to vector<1x16x8xbf16>
    "tpu.trace_start"() <{level = 10 : i32, message = "bcq,bqd->bcd"}> : () -> ()
    %cst_29 = arith.constant dense<0.000000e+00> : vector<1x16x64xf32>
    %67 = tpu.matmul %65, %8, %cst_29 {dimension_numbers = #tpu.dot_dimension_numbers<[2], [1], [1], [2], [0, 0, 0, 1, 1, 2], [0], [0]>} : vector<1x16x8xbf16>, vector<1x8x64xbf16>, vector<1x16x64xf32> -> vector<1x16x64xf32>
    "tpu.trace_stop"() : () -> ()
    "tpu.trace_start"() <{level = 10 : i32, message = "bcq,bcd->bqd"}> : () -> ()
    %cst_30 = arith.constant dense<0.000000e+00> : vector<1x8x64xf32>
    %68 = tpu.matmul %66, %7, %cst_30 {dimension_numbers = #tpu.dot_dimension_numbers<[1], [1], [2], [2], [0, 0, 0, 2, 1, 2], [0], [0]>} : vector<1x16x8xbf16>, vector<1x16x64xbf16>, vector<1x8x64xf32> -> vector<1x8x64xf32>
    "tpu.trace_stop"() : () -> ()
    %69 = arith.truncf %68 : vector<1x8x64xf32> to vector<1x8x64xbf16>
    "tpu.trace_start"() <{level = 10 : i32, message = "bcq,bqd->bcd"}> : () -> ()
    %cst_31 = arith.constant dense<0.000000e+00> : vector<1x16x64xf32>
    %70 = tpu.matmul %65, %69, %cst_31 {dimension_numbers = #tpu.dot_dimension_numbers<[2], [1], [1], [2], [0, 0, 0, 1, 1, 2], [0], [0]>} : vector<1x16x8xbf16>, vector<1x8x64xbf16>, vector<1x16x64xf32> -> vector<1x16x64xf32>
    "tpu.trace_stop"() : () -> ()
    %71 = arith.mulf %0, %67 : vector<1x16x64xf32>
    %72 = arith.mulf %0, %70 : vector<1x16x64xf32>
    %73 = tpu.concatenate %0, %67, %71, %72 in 2 : vector<1x16x64xf32>, vector<1x16x64xf32>, vector<1x16x64xf32>, vector<1x16x64xf32> -> vector<1x16x256xf32>
    %c0_32 = arith.constant 0 : index
    %c0_33 = arith.constant 0 : index
    %c0_34 = arith.constant 0 : index
    %74 = vector.load %arg9[%c0_32, %c0_33, %c0_34] : memref<1x16x256xf32, #tpu.memory_space<vmem>>, vector<1x16x256xf32>
    tpu.vector_store %arg9[%c0_32, %c0_33, %c0_34], %73 {strides = array<i32>} : memref<1x16x256xf32, #tpu.memory_space<vmem>>, vector<1x16x256xf32>,
    return
  }
  func.func @transform_0(%arg0: i32) -> (i32, i32, i32) {
    %c0_i32 = arith.constant 0 : i32
    %c0_i32_0 = arith.constant 0 : i32
    %c0_i32_1 = arith.constant 0 : i32
    return %arg0, %c0_i32, %c0_i32_0 : i32, i32, i32
  }
  func.func @transform_1(%arg0: i32) -> (i32, i32, i32) {
    %c0_i32 = arith.constant 0 : i32
    %c0_i32_0 = arith.constant 0 : i32
    %c0_i32_1 = arith.constant 0 : i32
    return %arg0, %c0_i32, %c0_i32_0 : i32, i32, i32
  }
  func.func @transform_2(%arg0: i32) -> (i32, i32, i32) {
    %c0_i32 = arith.constant 0 : i32
    %c0_i32_0 = arith.constant 0 : i32
    %c0_i32_1 = arith.constant 0 : i32
    return %arg0, %c0_i32, %c0_i32_0 : i32, i32, i32
  }
  func.func @transform_3(%arg0: i32) -> (i32, i32, i32) {
    %c0_i32 = arith.constant 0 : i32
    %c0_i32_0 = arith.constant 0 : i32
    %c0_i32_1 = arith.constant 0 : i32
    return %arg0, %c0_i32, %c0_i32_0 : i32, i32, i32
  }
  func.func @transform_4(%arg0: i32) -> (i32, i32) {
    %c0_i32 = arith.constant 0 : i32
    %c0_i32_0 = arith.constant 0 : i32
    %c0_i32_1 = arith.constant 0 : i32
    return %c0_i32, %c0_i32_0 : i32, i32
  }
  func.func @transform_5(%arg0: i32) -> (i32, i32) {
    %c0_i32 = arith.constant 0 : i32
    %c0_i32_0 = arith.constant 0 : i32
    %c0_i32_1 = arith.constant 0 : i32
    return %c0_i32, %c0_i32_0 : i32, i32
  }
  func.func @transform_6(%arg0: i32) -> (i32, i32) {
    %c0_i32 = arith.constant 0 : i32
    %c0_i32_0 = arith.constant 0 : i32
    %c0_i32_1 = arith.constant 0 : i32
    return %c0_i32, %c0_i32_0 : i32, i32
  }
  func.func @transform_7(%arg0: i32) -> (i32, i32) {
    %c0_i32 = arith.constant 0 : i32
    %c0_i32_0 = arith.constant 0 : i32
    %c0_i32_1 = arith.constant 0 : i32
    return %c0_i32, %c0_i32_0 : i32, i32
  }
  func.func @transform_8(%arg0: i32) -> (i32, i32, i32) {
    %c0_i32 = arith.constant 0 : i32
    %c0_i32_0 = arith.constant 0 : i32
    %c0_i32_1 = arith.constant 0 : i32
    return %arg0, %c0_i32, %c0_i32_0 : i32, i32, i32
  }
}

</mosaic_0001>

<bundles_post_ra>
// kernel: tpu_custom_call.1
= control target key start
LH: loop header
LB: loop body
LE: loop exit
PB: predicated region body
PF: predicated region fallthrough
CT: control target
= control target key end

     0   :  { %s1411_s0 = inlined_call_operand.vmem [shape: f32[2,16,64], index: 0, kind: input, shape index: {}]   ;;  %s1412_s1 = inlined_call_operand.hbm [shape: f32[2,8,64], index: 1, kind: input, shape index: {}]   ;;  %s1413_s2 = inlined_call_operand.vmem [shape: f32[2,16,1], index: 2, kind: input, shape index: {}]   ;;  %s1414_s3 = inlined_call_operand.vmem [shape: f32[2,1,8], index: 3, kind: input, shape index: {}]   ;;  %s1415_s4 = inlined_call_operand.vmem [shape: f32[1,64], index: 4, kind: input, shape index: {}]   ;;  %s1416_s5 = inlined_call_operand.vmem [shape: f32[1,64], index: 5, kind: input, shape index: {}]   ;;  %s1417_s6 = inlined_call_operand.vmem [shape: f32[1,64], index: 6, kind: input, shape index: {}]   ;;  %s1418_s7 = inlined_call_operand.<no memory space> [shape: f32[1,1], index: 7, kind: input, shape index: {}]   ;;  %s1419_s8 = inlined_call_operand.hbm [shape: f32[2,16,256], index: 8, kind: output, shape index: {}]  }
   0x1   :  { %v13_v0 = vstv %s1418_s7 }
   0x2   :  { %14 = vst [vmem:[#allocation2] sm:$0x1] %v13_v0 }
   0x3   :  { %15 = vsyncpa [#allocation4], 0 }
   0x4   :  { %17 = vsyncpa [#allocation4 + $0x1], 0 }
   0x5   :  { %18 = vsyncpa [#allocation5], 0 }
   0x6   :  { %20 = vsyncpa [#allocation5 + $0x1], 0  ;;  %s1161_s29 = smov 0   ;;  %s1163_s30 = smov 0  }
   0x7   :  { %s1165_s9 = smov 0   ;;  %s1167_s10 = smov 0  }
   0x8 LB: > { %s1182_s7 = sadd.s32 4294967295, %s1103_s10   ;;  %s879_s11 = sadd.s32 4294967294, %s1103_s10   ;;  %s1103_s10 = sphi %s1167_s10, %s1434_s10   ;;  %s1099_s9 = sphi %s1165_s9, %s1433_s9   ;;  %s1095_s30 = sphi %s1163_s30, %s1432_s30   ;;  %s1091_s29 = sphi %s1161_s29, %s1431_s29  }
   0x9   : > { %s1186_s12 = sadd.s32 1, %s1103_s10   ;;  %s59_s13 = sadd.s32 1, %s1099_s9 }
   0xa   : > { %s56_s14 = ssub.s32 %s1103_s10, %s1186_s12  ;;  %p66_p0 = scmp.ne.s32.totalorder %s1099_s9, %s1095_s30 }
   0xb   : > { %p57_p1 = scmp.eq.s32.totalorder %s56_s14, 0  ;;  %p67_p2 = scmp.eq.s32.totalorder %s1103_s10, 0 }
   0xc   : > { %p72_p3 = scmp.ne.s32.totalorder %s1095_s30, %s1091_s29  ;;  %p73_p4 = scmp.eq.s32.totalorder %s1182_s7, 0 }
   0xd   : > { %s1198_s15 = scalar_select %p57_p1, %s1099_s9, %s59_s13  }
   0xe   : > { %p1200_p5 = por %p67_p2, %p66_p0  ;;  %p1204_p6 = por %p73_p4, %p72_p3 }
   0xf   : > { %p232_p7 = scmp.eq.s32.totalorder %s1182_s7, 1  ;;  %p238_p8 = scmp.eq.s32.totalorder %s879_s11, 1 }
  0x10   : > { %p951_p10 = scmp.lt.s32.totalorder %s1103_s10, 2  ;;  %s278_s20 = sand.u32 1, %s1099_s9  }
  0x11   : > { %p1211_p11 = por %p232_p7, %p66_p0  ;;  %p1215_p12 = por %p238_p8, %p72_p3 }
  0x12   : > { %s883_s21 = sshll.u32 %s1103_s10, 7  ;;  %s882_s22 = sshll.u32 %s278_s20, 3 }
  0x13   : > { %s1423_s18 = scalar_select %p1211_p11, 1, 0 }
  0x14   : > { %s1424_s19 = scalar_select %p1215_p12, 1, 0 }
  0x15   : > { %s1224_s25 = scalar_lea.hbm %s1412_s1, %s883_s21  ;;  %s282_s26 = scalar_lea.vmem [#allocation3], %s882_s22 }
  0x16   : > { %s289_s27 = sshll.u32 %s282_s26, 4  ;;  %p1228_p13 = pnand %p951_p10, %p1200_p5  ;;  %s1232_s27 = int_to_ptr.vmem [resolvable:$true] %s289_s27 }
  0x17   : > { %s279_s11 = scalar_lea.sflag [#allocation4], %s278_s20  ;;  %s1007_s13 = scalar_lea.hbm %s1224_s25, 128 }
  0x18   : > { %p1008_p2 = scmp.ne.s32.totalorder %s1224_s25, %s1007_s13  ;;  %p1009_p3 = pneg %p1228_p13 }
  0x19   : > { %s1012_s21 = scalar_lea.hbm %s1412_s1, 256  ;;  %p1013_p5 = scmp.lt.u32.totalorder %s1224_s25, %s1412_s1 }
  0x1a   : > { %p1010_p4 = pnand %p1009_p3, %p1008_p2  ;;  %p1014_p8 = scmp.lt.u32.totalorder %s1012_s21, %s1007_s13 }
  0x1b   : > { %p1016_p9 = scmp.lt.u32.totalorder %s1007_s13, %s1224_s25 }
  0x1c   : > { %p1011_p7 = pneg %p1010_p4  ;;  %p1015_p10 = por %p1014_p8, %p1013_p5 }
  0x1e   : > { %p1017_p0 = por %p1016_p9, %p1015_p10 }
  0x20   : > { %p1018_p1 = pnand %p1017_p0, %p1011_p7 }
  0x22   : > { %1021 = shalt.err (!%p1018_p1)
}
  0x23   : > { %s1022_s20 = scalar_lea.vmem %s1232_s27, 128  ;;  %s1105_s24 = smov [#allocation3]  }
  0x24   : > { %p1023_p2 = scmp.ne.s32.totalorder %s1232_s27, %s1022_s20  ;;  %s1027_s26 = sshll.u32 %s1105_s24, 4  ;;  %s1028_s26 = int_to_ptr.vmem [resolvable:$false] %s1027_s26 }
  0x25   : > { %s1029_s14 = scalar_lea.vmem %s1028_s26, 256  ;;  %p1030_p11 = scmp.lt.s32.totalorder %s1232_s27, %s1028_s26 }
  0x26   : > { %p1025_p4 = pnand %p1023_p2, %p1009_p3  ;;  %p1031_p5 = scmp.lt.s32.totalorder %s1029_s14, %s1022_s20 }
  0x28   : > { %p1026_p12 = pneg %p1025_p4  ;;  %p1032_p8 = por %p1031_p5, %p1030_p11 }
  0x2a   : > { %p1033_p9 = pnand %p1032_p8, %p1026_p12 }
  0x2c   : > { %1036 = shalt.err (!%p1033_p9)
}
  0x2d   : > { %946 = dma.hbm_to_vmem [thread:$0]  (!%p1228_p13), %s1224_s25, 128, %s1232_s27, %s279_s11  }
  0x2e   : > { %p1426_p0 = scmp.lt.s32.totalorder %s1103_s10, 3  ;;  %p1427_p1 = scmp.ge.s32.totalorder %s1103_s10, 1 }
  0x30   : > { %p309_p3 = pnand %p1427_p1, %p1426_p0 }
  0x31   : > { %s1266_s13 = sand.u32 (!%p309_p3), 1, %s1095_s30  }
  0x32   : > { %312 = sbr.rel (%p309_p3) target bundleno = 1181 (0x49d), region = 52  ;;  %s885_s16 = sshll.u32 (!%p309_p3), %s1266_s13, 3 }
  0x33   : > { %s315_s21 = scalar_lea.sflag (!%p309_p3), [#allocation4], %s1266_s13  ;;  %s318_s22 = scalar_lea.vmem (!%p309_p3), [#allocation3], %s885_s16 }
  0x39   : > { %1082 = dma.done.wait (%p1204_p6), %s315_s21, 128  }
  0x3a   : > { %1084 = vsyncadd (%p1204_p6), %s315_s21, 4294967168  ;;  %p364_p11 = scmp.lt.s32.totalorder %s1182_s7, 1  ;;  %v1106_v1 = vmov 0.0   ;;  %vm1107_vm0 = vmmov 0   ;;  %v1108_v2 = vmov 0   ;;  %v380_v3 = vld [vmem:[%s318_s22] sm:$0xff]  ;;  %v471_v23 = vlaneseq }
  0x3b   : > { %915 = vmatprep.subr.bf16.mxu0 %v1106_v1  ;;  %917 = vmatprep.mubr.msk.bf16.mxu0 %vm1107_vm0, %v1106_v1  ;;  %vm397_vm1 = vcmask 523264   ;;  %v1294_v6 = vpack.c.bf16 %v380_v3, %v380_v3  ;;  %v893_v7 = vld [vmem:[%s1417_s6] ss:$0 sm:$0xff]  ;;  %vm513_vm5 = vcmask 64512   ;;  %vm582_vm9 = vcmask 1043456   ;;  %s906_s26 = sshll.u32 %s1182_s7, 9 }
  0x3c   : > { %s1279_s25 = scalar_select %p364_p11, %s1182_s7, 1  ;;  %991 = vset.pattern.permute.xlu1 %v1108_v2  ;;  %992 = vset.pattern.permute.xlu0 %v1108_v2  ;;  %v892_v8 = vld [vmem:[%s1416_s5] ss:$0 sm:$0xff]  ;;  %v472_v24 = vand.u32 127, %v471_v23  ;;  %v474_v25 = vshrl.u32 %v471_v23, 7  ;;  %vm642_vm10 = vcmask 130048  }
  0x3d   : > { %921 = vmatprep.subr.bf16.mxu1 %v1106_v1  ;;  %923 = vmatprep.mubr.msk.bf16.mxu1 %vm1107_vm0, %v1106_v1  ;;  %v891_v9 = vld [vmem:[%s1415_s4] ss:$0 sm:$0xff]  ;;  %v410_v10 = vmul.f32 %v892_v8, %v380_v3  ;;  %v427_v12 = vsel %vm397_vm1, %v1294_v6, 0  ;;  %s1366_s21 = scalar_lea.hbm %s1419_s8, %s906_s26  ;;  %s760_s7 = scalar_lea.sflag [#allocation5], %s1266_s13 }
  0x3e   : > { %s904_s17 = sshll.u32 %s1279_s25, 4  ;;  %916 = vmatpush3.bf16.xpose.msra.mxu0 %v427_v12  ;;  %v895_v21 = vld [vmem:[#allocation2] ss:$0 sm:$0xff]  ;;  %s376_s23 = scalar_lea.vmem %s1414_s3, %s1279_s25  ;;  %v475_v28 = vsub.s32 %v472_v24, %v474_v25  ;;  %v508_v29 = vsub.s32 0, %v474_v25 }
  0x3f   : > { %s368_s11 = scalar_lea.vmem %s1411_s0, %s904_s17  ;;  %v411_v16 = vsel %vm397_vm1, %v410_v10, 0.0  ;;  %933 = vmatprep.subr.bf16.mxu0 %v1106_v1  ;;  %s1321_s27 = scalar_lea.vmem %s1413_s2, %s904_s17  ;;  %v383_v26 = vld [vmem:[%s376_s23] sm:$0x1] }
  0x40   : > { %v1290_v4 = vld [vmem:[%s368_s11] sm:$0xff]  ;;  %v1292_v5 = vld [vmem:[%s368_s11 + $0x8] sm:$0xff]  ;;  %412 = vadd.xlane.f32.xlu1 %v411_v16  ;;  %vm504_vm3 = vcmp.gt.f32.partialorder %v383_v26, 0.0  ;;  %s1109_s25 = smov 64   ;;  %s886_s17 = sshll.u32 %s1266_s13, 5 }
  0x41   : > { %v395_v11 = vmul.f32 %v891_v9, %v1290_v4  ;;  %v420_v13 = vmul.f32 %v893_v7, %v1290_v4  ;;  %v421_v14 = vmul.f32 %v893_v7, %v1292_v5  ;;  %v396_v15 = vmul.f32 %v891_v9, %v1292_v5  ;;  %v382_v20 = vld [vmem:[%s1321_s27 + $0x8] sm:$0xff]  ;;  %v381_v50 = vld [vmem:[%s1321_s27] sm:$0xff]  ;;  %s363_s20 = scalar_lea.vmem [#allocation6], %s886_s17  ;;  %p1428_p12 = scmp.ne.s32.totalorder %s1423_s18, 0 }
  0x42   : > { %vm537_vm2 = vcmp.gt.f32.partialorder %v382_v20, 0.0  ;;  %v505_v30 = vsel %vm504_vm3, 1, %v1108_v2  ;;  %vm536_vm6 = vcmp.gt.f32.partialorder %v381_v50, 0.0  ;;  %s773_s24 = sshll.u32 %s363_s20, 4  ;;  %s1110_s27 = smov [#allocation6]   ;;  %s1359_s24 = int_to_ptr.vmem [resolvable:$true] %s773_s24 }
  0x43   : > { %v398_v17 = vsel %vm397_vm1, %v395_v11, 0.0  ;;  %v401_v18 = vsel %vm397_vm1, %v396_v15, 0.0  ;;  %v422_v19 = vpack.c.bf16 %v421_v14, %v420_v13  ;;  %v539_v22 = vsel %vm537_vm2, 1, %v1108_v2  ;;  %s1037_s22 = scalar_lea.vmem %s1359_s24, 512  ;;  %s1041_s28 = sshll.u32 %s1110_s27, 4  ;;  %s1042_s28 = int_to_ptr.vmem [resolvable:$false] %s1041_s28 }
  0x44   : > { %399 = vadd.xlane.f32.xlu0 %v398_v17  ;;  %v509_v35 = vrot.slane %v505_v30, %v508_v29  ;;  %v538_v51 = vsel %vm536_vm6, 1, %v1108_v2  ;;  %p1038_p6 = scmp.ne.s32.totalorder %s1359_s24, %s1037_s22  ;;  %s1043_s11 = scalar_lea.vmem %s1042_s28, 1024 }
  0x45   : > { %918 = vmatmul.mubr.msk.bf16.vlgmr.msra.gmra.mrb[0].mxu0 %vm397_vm1, %v422_v19  ;;  %v583_v19 = vsel %vm582_vm9, %v1294_v6, 0  ;;  %p1044_p10 = scmp.lt.s32.totalorder %s1359_s24, %s1042_s28  ;;  %p1045_p2 = scmp.lt.s32.totalorder %s1043_s11, %s1037_s22 }
  0x46   : > { %935 = vmatprep.mubr.msk.bf16.mxu0 %vm1107_vm0, %v1106_v1  ;;  %vm510_vm4 = vcmp.eq.s32.totalorder %v509_v35, 1  ;;  %922 = vmatpush3.bf16.msra.mxu1 %v583_v19  ;;  %p1039_p13 = pnand %p1038_p6, %p1428_p12 }
  0x47   : > { %927 = vmatprep.subr.bf16.mxu1 %v1106_v1  ;;  %p1046_p4 = por %p1045_p2, %p1044_p10 }
  0x48   : > { %402 = vadd.xlane.f32.xlu0 %v401_v18  ;;  %p1040_p7 = pneg %p1039_p13 }
  0x4a   : > { %p1047_p5 = pnand %p1046_p4, %p1040_p7 }
  0x51   : > { %499 = vperm.xlu1 %991, %v895_v21  }
  0x55   : > { %544 = vperm.xlu1 %991, %v539_v22  }
  0xcd   : > { %v413_v31 = vpop.xlane.xlu1 %412 }
  0xce   : > { %v476_v32 = vrot.slane %v413_v31, %v475_v28 }
  0xd1   : > { %v400_v27 = vpop.xlane.xlu0 %399  ;;  %v500_v42 = vpop.permute.xlu1 %499 }
  0xd5   : > { %v403_v34 = vpop.xlane.xlu0 %402  ;;  %v545_v58 = vpop.permute.xlu1 %544 }
  0xd6   : > { %vm547_vm7 = vcmp.eq.s32.totalorder %v545_v58, 1 }
 0x118   : > { %v463_v33 = vpop.f32.mrb[0].mxu0 }
 0x119   : > { %v464_v36 = vadd.f32 %v463_v33, %v400_v27  ;;  %v919_v37 = vpop.f32.mrb[1].mxu0 }
 0x11a   : > { %v466_v38 = vpop.f32.mrb[2].mxu0 }
 0x11b   : > { %v490_v39 = vadd.f32 %v476_v32, %v464_v36  ;;  %v467_v40 = vadd.f32 %v466_v38, %v403_v34  ;;  %v920_v41 = vpop.f32.mrb[3].mxu0 }
 0x11d   : > { %v491_v43 = vadd.f32 %v476_v32, %v467_v40  ;;  %v502_v44 = vadd.f32 %v500_v42, %v490_v39  ;;  %v387_v40 = vpack.c.bf16 %v1292_v5, %v1290_v4 }
 0x11f   : > { %v503_v45 = vadd.f32 %v500_v42, %v491_v43  ;;  %v511_v46 = vsel %vm510_vm4, %v502_v44, -1e+30 }
 0x120   : > { %v514_v47 = vsel %vm513_vm5, %v511_v46, -inf }
 0x121   : > { %515 = vmax.xlane.f32.xlu0 %v514_v47  ;;  %v512_v48 = vsel %vm510_vm4, %v503_v45, -1e+30  ;;  %v549_v59 = vsel %vm547_vm7, %v503_v45, -1e+30 }
 0x122   : > { %v517_v49 = vsel %vm513_vm5, %v512_v48, -inf  ;;  %v551_v63 = vsel %vm513_vm5, %v549_v59, -inf }
 0x125   : > { %518 = vmax.xlane.f32.xlu0 %v517_v49 }
 0x13b   : > { %541 = vperm.xlu0 %992, %v538_v51  }
 0x1ae   : > { %v516_v52 = vpop.xlane.xlu0 %515 }
 0x1af   : > { %v520_v53 = vsub.f32 %v511_v46, %v516_v52 }
 0x1b1   : > { %v522_v54 = vmul.f32 1.442695, %v520_v53 }
 0x1b2   : > { %v519_v55 = vpop.xlane.xlu0 %518 }
 0x1b3   : > { %993 = vpow2.f32 %v522_v54  ;;  %v521_v56 = vsub.f32 %v512_v48, %v519_v55 }
 0x1b5   : > { %v524_v57 = vmul.f32 1.442695, %v521_v56 }
 0x1b7   : > { %995 = vpow2.f32 %v524_v57 }
 0x1ba   : > { %v542_v60 = vpop.permute.xlu0 %541 }
 0x1bb   : > { %vm546_vm8 = vcmp.eq.s32.totalorder %v542_v60, 1 }
 0x1bc   : > { %v548_v61 = vsel %vm546_vm8, %v502_v44, -1e+30 }
 0x1bd   : > { %v994_v62 = vpop.eup %993  ;;  %v550_v0 = vsel %vm513_vm5, %v548_v61, -inf }
 0x1be   : > { %v552_v2 = vmax.f32 %v550_v0, %v551_v63  ;;  %v526_v3 = vsel %vm513_vm5, %v994_v62, 0.0 }
 0x1bf   : > { %527 = vadd.xlane.f32.xlu1 %v526_v3 }
 0x1c0   : > { %v553_v7 = vrot.slane %v552_v2, 4 }
 0x1c1   : > { %v996_v8 = vpop.eup %995 }
 0x1c2   : > { %v554_v9 = vmax.f32 %v552_v2, %v553_v7  ;;  %v529_v10 = vsel %vm513_vm5, %v996_v8, 0.0 }
 0x1c3   : > { %530 = vadd.xlane.f32.xlu0 %v529_v10 }
 0x1c4   : > { %v555_v11 = vrot.slane %v554_v9, 2 }
 0x1c6   : > { %v556_v12 = vmax.f32 %v554_v9, %v555_v11 }
 0x1c8   : > { %v557_v13 = vrot.slane %v556_v12, 1 }
 0x1ca   : > { %v558_v14 = vmax.f32 %v556_v12, %v557_v13 }
 0x1cc   : > { %v559_v15 = vsub.f32 %v548_v61, %v558_v14  ;;  %v560_v16 = vsub.f32 %v549_v59, %v558_v14 }
 0x1ce   : > { %v561_v17 = vmul.f32 1.442695, %v559_v15  ;;  %v563_v18 = vmul.f32 1.442695, %v560_v16 }
 0x1d0   : > { %997 = vpow2.f32 %v561_v17 }
 0x1d1   : > { %999 = vpow2.f32 %v563_v18 }
 0x1da   : > { %v998_v20 = vpop.eup %997 }
 0x1db   : > { %v1000_v21 = vpop.eup %999  ;;  %v565_v22 = vsel %vm513_vm5, %v998_v20, 0.0 }
 0x1dc   : > { %v566_v23 = vsel %vm513_vm5, %v1000_v21, 0.0 }
 0x1dd   : > { %v567_v24 = vadd.f32 %v566_v23, %v565_v22 }
 0x1df   : > { %v568_v25 = vrot.slane %v567_v24, 4 }
 0x1e1   : > { %v569_v26 = vadd.f32 %v568_v25, %v567_v24 }
 0x1e3   : > { %v570_v27 = vrot.slane %v569_v26, 2 }
 0x1e5   : > { %v571_v28 = vadd.f32 %v570_v27, %v569_v26 }
 0x1e7   : > { %v572_v29 = vrot.slane %v571_v28, 1 }
 0x1e9   : > { %v573_v30 = vadd.f32 %v572_v29, %v571_v28 }
 0x1eb   : > { %1001 = vrcp.f32 %v573_v30 }
 0x1f5   : > { %v1002_v31 = vpop.eup %1001 }
 0x1f6   : > { %v575_v32 = vmul.f32 %v1002_v31, %v998_v20  ;;  %v576_v6 = vmul.f32 %v1002_v31, %v1000_v21 }
 0x1f8   : > { %v578_v33 = vpack.c.bf16 %v576_v6, %v575_v32 }
 0x1fa   : > { %626 = vxpose.xlu1.c.b16.start.end [1/1] (short) (narrow) %v578_v33, 16 }
 0x24c   : > { %v528_v34 = vpop.xlane.xlu1 %527 }
 0x24d   : > { %1003 = vrcp.f32 %v528_v34 }
 0x250   : > { %v531_v35 = vpop.xlane.xlu0 %530 }
 0x251   : > { %1005 = vrcp.f32 %v531_v35 }
 0x257   : > { %v1004_v36 = vpop.eup %1003 }
 0x258   : > { %v534_v38 = vmul.f32 %v1004_v36, %v994_v62 }
 0x25b   : > { %v1006_v37 = vpop.eup %1005 }
 0x25c   : > { %v535_v39 = vmul.f32 %v1006_v37, %v996_v8 }
 0x25e   : > { %v577_v41 = vpack.c.bf16 %v535_v39, %v534_v38 }
 0x260   : > { %924 = vmatmul.mubr.msk.bf16.vlgmr.msra.gmra.mrb[0].mxu1 %vm513_vm5, %v577_v41  ;;  %v634_v42 = vpop.trf.xlu1 }
 0x261   : > { %928 = vmatpush3.bf16.msra.mxu1 %v387_v40  ;;  %929 = vmatprep.mubr.msk.bf16.mxu1 %vm1107_vm0, %v1106_v1 }
 0x268   : > { %930 = vmatmul.mubr.msk.bf16.vlgmr.msra.gmra.mrb[4].mxu1 %vm642_vm10, %v634_v42 }
 0x333   : > { %v619_v43 = vpop.f32.mrb[0].mxu1 }
 0x334   : > { %737 = vrot.lane.b32.xlu0 %v619_v43, %s1109_s25  ;;  %v925_v44 = vpop.f32.mrb[1].mxu1  ;;  %v731_v62 = vmul.f32 %v619_v43, %v1290_v4 }
 0x335   : > { %v622_v45 = vpop.f32.mrb[2].mxu1 }
 0x336   : > { %739 = vrot.lane.b32.xlu1 %v622_v45, %s1109_s25  ;;  %v926_v46 = vpop.f32.mrb[3].mxu1  ;;  %v732_v0 = vmul.f32 %v622_v45, %v1292_v5 }
 0x33b   : > { %v680_v47 = vpop.f32.mrb[4].mxu1 }
 0x33c   : > { %v686_v48 = vpack.c.bf16 %v680_v47, %v680_v47  ;;  %v931_v49 = vpop.f32.mrb[5].mxu1 }
 0x33d   : > { %v683_v50 = vpop.f32.mrb[6].mxu1 }
 0x33e   : > { %v688_v51 = vsel %vm582_vm9, %v686_v48, 0  ;;  %v932_v52 = vpop.f32.mrb[7].mxu1 }
 0x33f   : > { %934 = vmatpush3.bf16.msra.mxu0 %v688_v51 }
 0x342   : > { %936 = vmatmul.mubr.msk.bf16.vlgmr.msra.gmra.mrb[4].mxu0 %vm513_vm5, %v577_v41 }
 0x3a6   : > { %v738_v1 = vpop.permute.xlu0 %737 }
 0x3a7   : > { %v751_v53 = vsel %vm397_vm1, %v1290_v4, %v738_v1 }
 0x3a8   : > { %755 = vst [vmem:[%s363_s20] sm:$0xff] %v751_v53  ;;  %v740_v54 = vpop.permute.xlu1 %739 }
 0x3a9   : > { %v752_v55 = vsel %vm397_vm1, %v1292_v5, %v740_v54 }
 0x3aa   : > { %757 = vst [vmem:[%s363_s20 + $0x10] sm:$0xff] %v752_v55 }
 0x415   : > { %v724_v56 = vpop.f32.mrb[4].mxu0 }
 0x416   : > { %v733_v57 = vmul.f32 %v724_v56, %v1290_v4  ;;  %v937_v58 = vpop.f32.mrb[5].mxu0 }
 0x417   : > { %v727_v59 = vpop.f32.mrb[6].mxu0 }
 0x418   : > { %v734_v60 = vmul.f32 %v727_v59, %v1292_v5  ;;  %745 = vrot.lane.b32.xlu1 %v733_v57, %s1109_s25  ;;  %v938_v61 = vpop.f32.mrb[7].mxu0 }
 0x41a   : > { %747 = vrot.lane.b32.xlu0 %v734_v60, %s1109_s25 }
 0x48a   : > { %v746_v63 = vpop.permute.xlu1 %745 }
 0x48b   : > { %v753_v2 = vsel %vm397_vm1, %v731_v62, %v746_v63 }
 0x48c   : > { %756 = vst [vmem:[%s363_s20 + $0x8] sm:$0xff] %v753_v2  ;;  %v748_v3 = vpop.permute.xlu0 %747 }
 0x48d   : > { %v754_v7 = vsel %vm397_vm1, %v732_v0, %v748_v3 }
 0x48e   : > { %758 = vst [vmem:[%s363_s20 + $0x18] sm:$0xff] %v754_v7 }
 0x48f   : > { %1050 = shalt.err (!%p1047_p5)
}
 0x490   : > { %s1051_s23 = scalar_lea.hbm %s1366_s21, 512  ;;  %s1055_s20 = scalar_lea.hbm %s1419_s8, 1024 }
 0x491   : > { %p1052_p8 = scmp.ne.s32.totalorder %s1366_s21, %s1051_s23  ;;  %p1056_p1 = scmp.lt.u32.totalorder %s1366_s21, %s1419_s8 }
 0x492   : > { %p1057_p3 = scmp.lt.u32.totalorder %s1055_s20, %s1051_s23  ;;  %p1059_p6 = scmp.lt.u32.totalorder %s1051_s23, %s1366_s21 }
 0x493   : > { %p1053_p9 = pnand %p1052_p8, %p1428_p12 }
 0x494   : > { %p1058_p11 = por %p1057_p3, %p1056_p1 }
 0x495   : > { %p1054_p0 = pneg %p1053_p9 }
 0x496   : > { %p1060_p13 = por %p1059_p6, %p1058_p11 }
 0x498   : > { %p1061_p7 = pnand %p1060_p13, %p1054_p0 }
 0x49a   : > { %1064 = shalt.err (!%p1061_p7)
}
 0x49b   : > { %s1111_s16 = smov 256   ;;  %s1112_s22 = smov 16  }
 0x49c   : > { %941 = dma.vmem_to_hbm [thread:$0]  (%p1428_p12), %s1359_s24, 512, %s1366_s21, %s760_s7, %s1111_s16, %s1111_s16, %s1112_s22  }
 0x49d PF: > { %s788_s27 = sand.u32 1, %s1091_s29   ;;  %p1429_p10 = scmp.ne.s32.totalorder %s1424_s19, 0 }
 0x49e   : > { %p1430_p2 = scmp.ge.s32.totalorder %s1103_s10, 2  ;;  %s789_s28 = scalar_lea.sflag [#allocation5], %s788_s27 }
 0x4a0   : > { %p948_p4 = pnand %p1430_p2, %p1429_p10 }
 0x4a2   : > { %1086 = dma.done.wait (!%p948_p4), %s789_s28, 512  }
 0x4a3   : > { %1088 = vsyncadd (!%p948_p4), %s789_s28, 4294966784  ;;  %p23_p5 = scmp.ge.s32.totalorder %s1186_s12, 4   ;;  %s1431_s29 = smov %s1095_s30 }
 0x4a4   : > { %s1432_s30 = smov %s1099_s9  ;;  %s1433_s9 = smov %s1198_s15 }
 0x4a5   : > { %s1434_s10 = smov %s1186_s12  ;;  %25 = sbr.rel (!%p23_p5) target bundleno = 8 (0x8), region = 106 }
 0x4ac   :  { %794 = vsyncpa [#allocation4], 1 }
 0x4ad   :  { %796 = vsyncpa [#allocation4 + $0x1], 1 }
 0x4ae   :  { %797 = vsyncpa [#allocation5], 1 }
 0x4af   :  { %799 = vsyncpa [#allocation5 + $0x1], 1 }

</bundles_post_ra>
